<compile_context>
chip_gen: v7x
topology: tpu7x:2x2x1
jax: 0.10.0
libtpu: 0.0.40
codegen_flags: <defaults>
</compile_context>

<pallas_src>
import functools
import math

import jax
import jax.numpy as jnp
from jax.experimental import pallas as pl
from jax.experimental.pallas import tpu as pltpu


def _interp_matrix(in_size: int, out_size: int) -> jnp.ndarray:
    """Row-interpolation matrix for 1-D linear resize, align_corners=True."""
    if out_size == 1 or in_size == 1:
        # Degenerate case: every output row copies input row 0.
        w = jnp.zeros((out_size, in_size), jnp.float32)
        return w.at[:, 0].set(1.0)
    dst = jnp.arange(out_size, dtype=jnp.float32)
    src = dst * (in_size - 1) / (out_size - 1)
    i0 = jnp.clip(jnp.floor(src).astype(jnp.int32), 0, in_size - 1)
    i1 = jnp.clip(i0 + 1, 0, in_size - 1)
    frac = src - i0.astype(jnp.float32)
    w = jnp.zeros((out_size, in_size), jnp.float32)
    rows = jnp.arange(out_size)
    w = w.at[rows, i0].add(1.0 - frac)
    w = w.at[rows, i1].add(frac)
    return w


def _interp_kernel(x_ref, wh_ref, wwt_ref, o_ref):
    # x_ref:   (C_BLK, H, W)         input planes for this channel block
    # wh_ref:  (H_out, H)            height interpolation weights
    # wwt_ref: (W, W_out)            width interpolation weights (pre-transposed)
    # o_ref:   (C_BLK*H_out, W_out)  output slab for this channel block
    c_blk = x_ref.shape[0]
    wh = wh_ref[...]
    wwt = wwt_ref[...]

    # Height pass: statically unrolled over the channel block; each iteration is a
    # small (H_out, H) @ (H, W) matmul.  Results are stacked along the sublane axis.
    rows = [
        jnp.dot(wh, x_ref[c].astype(jnp.float32),
                preferred_element_type=jnp.float32)
        for c in range(c_blk)
    ]
    t = rows[0] if c_blk == 1 else jnp.concatenate(rows, axis=0)   # (C_BLK*H_out, W)

    # Width pass: one large flattened GEMM that actually fills the MXU M dimension.
    out = jnp.dot(t, wwt, preferred_element_type=jnp.float32)      # (C_BLK*H_out, W_out)
    o_ref[...] = out.astype(o_ref.dtype)
    # TODO(synk): on v5e with very large planes, a roll+lerp (2-tap VPU) formulation
    # would avoid the dense-weight FLOP overhead; the MXU path is kept here since it is
    # mem-bound on v6e/v7x and exact for the shipped shapes.


def _pick_channel_block(nc: int, h: int, w: int, h_out: int, w_out: int) -> int:
    """Planes per grid step: as many as fit a ~6 MiB double-buffered working set."""
    itemsize = 4
    per_plane = 2 * (h * w + h_out * w_out) * itemsize   # double-buffered in + out tile
    budget = 6 * 1024 * 1024                              # < v5e 16 MiB default scoped VMEM
    c_blk = max(1, min(nc, 64, budget // max(per_plane, 1)))
    # Keep a few grid steps alive (pipeline overlap; v7x 2-TensorCore sharding) as long
    # as each step still batches >= 4 planes.
    while c_blk > 4 and -(-nc // c_blk) < 4:
        c_blk //= 2
    # Keep the output slab's sublane extent (c_blk * h_out) a multiple of 8.
    g = 8 // math.gcd(h_out, 8)
    c_blk = max(g, (c_blk // g) * g)
    return int(c_blk)


@functools.partial(jax.jit, static_argnames=("scale_factor",))
def interpolate_bilinear(x: jnp.ndarray, scale_factor: int = 2) -> jnp.ndarray:
    """F.interpolate(x, scale_factor=2, mode='bilinear', align_corners=True) on NCHW."""
    n, c, h, w = x.shape
    h_out, w_out = h * scale_factor, w * scale_factor

    wh = _interp_matrix(h, h_out)         # (H_out, H)
    wwt = _interp_matrix(w, w_out).T      # (W, W_out): transposed once, outside the kernel

    nc = n * c
    c_blk = _pick_channel_block(nc, h, w, h_out, w_out)
    num_blocks = -(-nc // c_blk)
    nc_pad = num_blocks * c_blk

    x_flat = x.reshape(nc, h, w)
    if nc_pad != nc:
        x_flat = jnp.pad(x_flat, ((0, nc_pad - nc), (0, 0), (0, 0)))

    out_flat = pl.pallas_call(
        _interp_kernel,
        out_shape=jax.ShapeDtypeStruct((nc_pad * h_out, w_out), x.dtype),
        grid_spec=pltpu.PrefetchScalarGridSpec(
            num_scalar_prefetch=0,
            grid=(num_blocks,),
            in_specs=[
                pl.BlockSpec((c_blk, h, w), lambda i: (i, 0, 0)),
                pl.BlockSpec((h_out, h), lambda i: (0, 0)),   # constant-index: stays resident
                pl.BlockSpec((w, w_out), lambda i: (0, 0)),   # constant-index: stays resident
            ],
            out_specs=pl.BlockSpec((c_blk * h_out, w_out), lambda i: (i, 0)),
        ),
        compiler_params=pltpu.CompilerParams(
            dimension_semantics=("parallel",),
            vmem_limit_bytes=32 * 1024 * 1024,
        ),
    )(x_flat, wh, wwt)

    out = out_flat.reshape(nc_pad, h_out, w_out)[:nc]
    return out.reshape(n, c, h_out, w_out)


def _reference(x: jnp.ndarray, scale_factor: int = 2) -> jnp.ndarray:
    """Pure-JAX gather-based bilinear (align_corners=True) reference."""
    n, c, h, w = x.shape
    h_out, w_out = h * scale_factor, w * scale_factor
    sy = jnp.arange(h_out, dtype=jnp.float32) * (h - 1) / max(h_out - 1, 1)
    sx = jnp.arange(w_out, dtype=jnp.float32) * (w - 1) / max(w_out - 1, 1)
    y0 = jnp.clip(jnp.floor(sy).astype(jnp.int32), 0, h - 1)
    x0 = jnp.clip(jnp.floor(sx).astype(jnp.int32), 0, w - 1)
    y1 = jnp.clip(y0 + 1, 0, h - 1)
    x1 = jnp.clip(x0 + 1, 0, w - 1)
    fy = (sy - y0)[None, None, :, None]
    fx = (sx - x0)[None, None, None, :]
    g = lambda yi, xi: x[:, :, yi[:, None], xi[None, :]]
    top = g(y0, x0) * (1 - fx) + g(y0, x1) * fx
    bot = g(y1, x0) * (1 - fx) + g(y1, x1) * fx
    return top * (1 - fy) + bot * fy


if __name__ == "__main__":
    key = jax.random.PRNGKey(0)
    x = jax.random.normal(key, (2, 4, 16, 16), dtype=jnp.float32)

    out = interpolate_bilinear(x, scale_factor=2)
    out = jax.block_until_ready(out)

    assert out.shape == (2, 4, 32, 32), out.shape
    ref = _reference(x, scale_factor=2)
    assert jnp.allclose(out, ref, atol=1e-5, rtol=1e-5), float(jnp.max(jnp.abs(out - ref)))

    print("KERNEL_OK")
</pallas_src>

<mosaic_0001>
module attributes {stable_mosaic.version = 11 : i64} {
  func.func private @main(%arg0: i32) attributes {dimension_semantics = [#tpu.dimension_semantics<core_parallel>], iteration_bounds = array<i64: 2>, tpu.core_type = #tpu.core_type<sc_scalar_subcore>, window_params = []} {
    return
  }
}

module attributes {stable_mosaic.version = 11 : i64} {
  func.func private @main(%arg0: i32) attributes {dimension_semantics = [#tpu.dimension_semantics<core_parallel>], iteration_bounds = array<i64: 2>, tpu.core_type = #tpu.core_type<sc_scalar_subcore>, window_params = []} {
    return
  }
}

module attributes {stable_mosaic.version = 11 : i64} {
  func.func @_interp_kernel(%arg0: i32, %arg1: memref<4x16x16xf32, #tpu.memory_space<vmem>>, %arg2: memref<32x16xf32, #tpu.memory_space<vmem>>, %arg3: memref<16x32xf32, #tpu.memory_space<vmem>>, %arg4: memref<128x32xf32, #tpu.memory_space<vmem>>) attributes {dimension_semantics = [#tpu.dimension_semantics<parallel>], iteration_bounds = array<i64: 2>, scalar_prefetch = 0 : i64, scratch_operands = 0 : i64, tpu.core_type = #tpu.core_type<tc>, window_params = [{transform_indices = @transform_0, window_bounds = array<i64: 4, 16, 16>}, {pipeline_mode = #tpu.pipeline_mode<synchronous>, transform_indices = @transform_1, window_bounds = array<i64: 32, 16>}, {pipeline_mode = #tpu.pipeline_mode<synchronous>, transform_indices = @transform_2, window_bounds = array<i64: 16, 32>}, {transform_indices = @transform_3, window_bounds = array<i64: 128, 32>}]} {
    %c0 = arith.constant 0 : index
    %c0_0 = arith.constant 0 : index
    %0 = vector.load %arg2[%c0, %c0_0] : memref<32x16xf32, #tpu.memory_space<vmem>>, vector<32x16xf32>
    %c0_1 = arith.constant 0 : index
    %c0_2 = arith.constant 0 : index
    %1 = vector.load %arg3[%c0_1, %c0_2] : memref<16x32xf32, #tpu.memory_space<vmem>>, vector<16x32xf32>
    %c0_3 = arith.constant 0 : index
    %c0_4 = arith.constant 0 : index
    %c0_5 = arith.constant 0 : index
    %2 = vector.load %arg1[%c0_3, %c0_4, %c0_5] : memref<4x16x16xf32, #tpu.memory_space<vmem>>, vector<1x16x16xf32>
    %3 = vector.shape_cast %2 : vector<1x16x16xf32> to vector<16x16xf32>
    %cst = arith.constant dense<0.000000e+00> : vector<32x16xf32>
    %4 = tpu.matmul %0, %3, %cst {dimension_numbers = #tpu.dot_dimension_numbers<[1], [0], [0], [1], [0, 0, 1, 1], [], []>} : vector<32x16xf32>, vector<16x16xf32>, vector<32x16xf32> -> vector<32x16xf32>
    %c1 = arith.constant 1 : index
    %c0_6 = arith.constant 0 : index
    %c0_7 = arith.constant 0 : index
    %5 = vector.load %arg1[%c1, %c0_6, %c0_7] : memref<4x16x16xf32, #tpu.memory_space<vmem>>, vector<1x16x16xf32>
    %6 = vector.shape_cast %5 : vector<1x16x16xf32> to vector<16x16xf32>
    %cst_8 = arith.constant dense<0.000000e+00> : vector<32x16xf32>
    %7 = tpu.matmul %0, %6, %cst_8 {dimension_numbers = #tpu.dot_dimension_numbers<[1], [0], [0], [1], [0, 0, 1, 1], [], []>} : vector<32x16xf32>, vector<16x16xf32>, vector<32x16xf32> -> vector<32x16xf32>
    %c2 = arith.constant 2 : index
    %c0_9 = arith.constant 0 : index
    %c0_10 = arith.constant 0 : index
    %8 = vector.load %arg1[%c2, %c0_9, %c0_10] : memref<4x16x16xf32, #tpu.memory_space<vmem>>, vector<1x16x16xf32>
    %9 = vector.shape_cast %8 : vector<1x16x16xf32> to vector<16x16xf32>
    %cst_11 = arith.constant dense<0.000000e+00> : vector<32x16xf32>
    %10 = tpu.matmul %0, %9, %cst_11 {dimension_numbers = #tpu.dot_dimension_numbers<[1], [0], [0], [1], [0, 0, 1, 1], [], []>} : vector<32x16xf32>, vector<16x16xf32>, vector<32x16xf32> -> vector<32x16xf32>
    %c3 = arith.constant 3 : index
    %c0_12 = arith.constant 0 : index
    %c0_13 = arith.constant 0 : index
    %11 = vector.load %arg1[%c3, %c0_12, %c0_13] : memref<4x16x16xf32, #tpu.memory_space<vmem>>, vector<1x16x16xf32>
    %12 = vector.shape_cast %11 : vector<1x16x16xf32> to vector<16x16xf32>
    %cst_14 = arith.constant dense<0.000000e+00> : vector<32x16xf32>
    %13 = tpu.matmul %0, %12, %cst_14 {dimension_numbers = #tpu.dot_dimension_numbers<[1], [0], [0], [1], [0, 0, 1, 1], [], []>} : vector<32x16xf32>, vector<16x16xf32>, vector<32x16xf32> -> vector<32x16xf32>
    %14 = tpu.concatenate %4, %7, %10, %13 in 0 : vector<32x16xf32>, vector<32x16xf32>, vector<32x16xf32>, vector<32x16xf32> -> vector<128x16xf32>
    %cst_15 = arith.constant dense<0.000000e+00> : vector<128x32xf32>
    %15 = tpu.matmul %14, %1, %cst_15 {dimension_numbers = #tpu.dot_dimension_numbers<[1], [0], [0], [1], [0, 0, 1, 1], [], []>} : vector<128x16xf32>, vector<16x32xf32>, vector<128x32xf32> -> vector<128x32xf32>
    %c0_16 = arith.constant 0 : index
    %c0_17 = arith.constant 0 : index
    %16 = vector.load %arg4[%c0_16, %c0_17] : memref<128x32xf32, #tpu.memory_space<vmem>>, vector<128x32xf32>
    tpu.vector_store %arg4[%c0_16, %c0_17], %15 {strides = array<i32>} : memref<128x32xf32, #tpu.memory_space<vmem>>, vector<128x32xf32>,
    return
  }
  func.func @transform_0(%arg0: i32) -> (i32, i32, i32) {
    %c0_i32 = arith.constant 0 : i32
    %c0_i32_0 = arith.constant 0 : i32
    %c0_i32_1 = arith.constant 0 : i32
    return %arg0, %c0_i32, %c0_i32_0 : i32, i32, i32
  }
  func.func @transform_1(%arg0: i32) -> (i32, i32) {
    %c0_i32 = arith.constant 0 : i32
    %c0_i32_0 = arith.constant 0 : i32
    %c0_i32_1 = arith.constant 0 : i32
    return %c0_i32, %c0_i32_0 : i32, i32
  }
  func.func @transform_2(%arg0: i32) -> (i32, i32) {
    %c0_i32 = arith.constant 0 : i32
    %c0_i32_0 = arith.constant 0 : i32
    %c0_i32_1 = arith.constant 0 : i32
    return %c0_i32, %c0_i32_0 : i32, i32
  }
  func.func @transform_3(%arg0: i32) -> (i32, i32) {
    %c0_i32 = arith.constant 0 : i32
    %c0_i32_0 = arith.constant 0 : i32
    return %arg0, %c0_i32 : i32, i32
  }
}

</mosaic_0001>

<bundles_post_ra>
// kernel: interpolate_bilinear.1
= control target key start
LH: loop header
LB: loop body
LE: loop exit
PB: predicated region body
PF: predicated region fallthrough
CT: control target
= control target key end

     0   :  { %8 = vsyncpa [#allocation3], 0  ;;  %s1335_s0 = inlined_call_operand.vmem [shape: f32[8,16,16], index: 0, kind: input, shape index: {}]   ;;  %s1336_s1 = inlined_call_operand.vmem [shape: f32[32,16], index: 1, kind: input, shape index: {}]   ;;  %s1337_s2 = inlined_call_operand.vmem [shape: f32[16,32], index: 2, kind: input, shape index: {}]   ;;  %s1338_s3 = inlined_call_operand.hbm [shape: f32[256,32], index: 3, kind: output, shape index: {}]  }
   0x1   :  { %10 = vsyncpa [#allocation3 + $0x1], 0  ;;  %s1144_s12 = smov 0   ;;  %s1146_s13 = smov 0  }
   0x2   :  { %s1148_s14 = smov 0   ;;  %s1150_s15 = smov 0  }
   0x3 LB: > { %s1165_s16 = sadd.s32 4294967295, %s1119_s15   ;;  %s831_s17 = sadd.s32 4294967294, %s1119_s15   ;;  %s1119_s15 = sphi %s1150_s15, %s1344_s15   ;;  %s1115_s14 = sphi %s1148_s14, %s1343_s14   ;;  %s1111_s13 = sphi %s1146_s13, %s1342_s13   ;;  %s1107_s12 = sphi %s1144_s12, %s1341_s12  }
   0x4   : > { %s1169_s18 = sadd.s32 1, %s1119_s15   ;;  %s91_s19 = sadd.s32 1, %s1115_s14 }
   0x5   : > { %s88_s20 = ssub.s32 %s1119_s15, %s1169_s18  ;;  %p101_p0 = scmp.ne.s32.totalorder %s1115_s14, %s1111_s13 }
   0x6   : > { %p89_p1 = scmp.eq.s32.totalorder %s88_s20, 0  ;;  %p102_p2 = scmp.eq.s32.totalorder %s1165_s16, 1 }
   0x7   : > { %p107_p3 = scmp.ne.s32.totalorder %s1111_s13, %s1107_s12  ;;  %p108_p4 = scmp.eq.s32.totalorder %s831_s17, 1 }
   0x8   : > { %s1180_s21 = scalar_select %p89_p1, %s1115_s14, %s91_s19  }
   0x9   : > { %p1182_p5 = por %p102_p2, %p101_p0  ;;  %p1186_p6 = por %p108_p4, %p107_p3 }
   0xa   : > { %p834_p7 = scmp.ge.s32.totalorder %s1119_s15, 1  ;;  %p142_p8 = scmp.lt.s32.totalorder %s1119_s15, 3 }
   0xc   : > { %p143_p9 = pnand %p834_p7, %p142_p8 }
   0xd   : > { %s836_s24 = sshll.u32 (!%p143_p9), %s1165_s16, 2  ;;  %v175_v0 = vld [vmem:[%s1336_s1] sm:$0xff] (!%p143_p9)  ;;  %vm183_vm0 = vcmask (!%p143_p9), 130048   ;;  %v180_v13 = vld [vmem:[%s1337_s2 + $0x8] sm:$0xff] (!%p143_p9)  ;;  %v177_v16 = vld [vmem:[%s1336_s1 + $0x10] sm:$0xff] (!%p143_p9)  ;;  %s164_s20 = sand.u32 (!%p143_p9), 1, %s1111_s13  }
   0xe   : > { %146 = sbr.rel (%p143_p9) target bundleno = 493 (0x1ed), region = 32  ;;  %p168_p10 = scmp.lt.s32.totalorder (!%p143_p9), %s836_s24, 7  ;;  %930 = vmatprep.mubr.msk.f32.mxu0 (!%p143_p9), %vm183_vm0, %v175_v0  ;;  %940 = vmatprep.mubr.msk.f32.mxu1 (!%p143_p9), %vm183_vm0, %v175_v0  ;;  %v179_v4 = vld [vmem:[%s1337_s2] sm:$0xff] (!%p143_p9)  ;;  %v176_v15 = vld [vmem:[%s1336_s1 + $0x8] sm:$0xff] (!%p143_p9)  ;;  %v178_v18 = vld [vmem:[%s1336_s1 + $0x18] sm:$0xff] (!%p143_p9)  ;;  %vm738_vm1 = vcmask (!%p143_p9), 261120  }
   0xf   : > { %v1010_v17 = vpack.c.bf16 (!%p143_p9), %v180_v13, %v179_v4  ;;  %s883_s26 = sshll.u32 (!%p143_p9), %s1165_s16, 11  ;;  %s1294_s16 = scalar_lea.sflag (!%p143_p9), [#allocation3], %s164_s20 }
  0x10   : > { %s1121_s5 = smov (!%p143_p9), [#allocation2]  }
  0x11   : > { %s1061_s6 = sshll.u32 (!%p143_p9), %s1121_s5, 4  ;;  %s1062_s6 = int_to_ptr.vmem [resolvable:$false] %s1061_s6 }
  0x12   : > { %s1063_s7 = scalar_lea.vmem (!%p143_p9), %s1062_s6, 4096 }
  0x15   : > { %s1346_s24 = smov (!%p168_p10, %s836_s24), 7 }
  0x16   : > { %s882_s27 = sshll.u32 %s1346_s24, 4  ;;  %s835_s24 = sshll.u32 %s164_s20, 7 }
  0x17   : > { %s172_s30 = scalar_lea.vmem %s1335_s0, %s882_s27  ;;  %s1249_s25 = scalar_lea.vmem [#allocation2], %s835_s24 }
  0x18   : > { %v181_v1 = vld [vmem:[%s172_s30] sm:$0xff]  ;;  %v182_v2 = vld [vmem:[%s172_s30 + $0x8] sm:$0xff]  ;;  %v843_v7 = vld [vmem:[%s172_s30 + $0x10] sm:$0xff]  ;;  %s769_s27 = sshll.u32 %s1249_s25, 4  ;;  %s1286_s27 = int_to_ptr.vmem [resolvable:$true] %s769_s27 }
  0x19   : > { %v849_v3 = vld [vmem:[%s172_s30 + $0x20] sm:$0xff]  ;;  %v994_v5 = vpack.c.bf16 %v182_v2, %v181_v1  ;;  %v850_v6 = vld [vmem:[%s172_s30 + $0x28] sm:$0xff]  ;;  %v844_v8 = vld [vmem:[%s172_s30 + $0x18] sm:$0xff]  ;;  %s1057_s4 = scalar_lea.vmem %s1286_s27, 2048  ;;  %p1064_p0 = scmp.lt.s32.totalorder %s1286_s27, %s1062_s6 }
  0x1a   : > { %v1002_v9 = vpack.c.bf16 %v850_v6, %v849_v3  ;;  %v998_v10 = vpack.c.bf16 %v844_v8, %v843_v7  ;;  %v855_v11 = vld [vmem:[%s172_s30 + $0x30] sm:$0xff]  ;;  %v856_v12 = vld [vmem:[%s172_s30 + $0x38] sm:$0xff]  ;;  %s1284_s30 = scalar_lea.hbm %s1338_s3, %s883_s26  ;;  %p1058_p11 = scmp.ne.s32.totalorder %s1286_s27, %s1057_s4 }
  0x1b   : > { %995 = vmatprep.subr.bf16.mxu0 %v994_v5  ;;  %v1006_v14 = vpack.c.bf16 %v856_v12, %v855_v11  ;;  %p1065_p1 = scmp.lt.s32.totalorder %s1063_s7, %s1057_s4 }
  0x1c   : > { %997 = vmatpush3.bf16.msra.mxu0 %v994_v5  ;;  %999 = vmatprep.subr.bf16.mxu1 %v998_v10  ;;  %p1059_p12 = pnand %p1058_p11, %p1182_p5 }
  0x1d   : > { %1003 = vmatprep.subr.bf16.mxu0 %v1002_v9  ;;  %1001 = vmatpush3.bf16.msra.mxu1 %v998_v10  ;;  %p1066_p2 = por %p1065_p1, %p1064_p0 }
  0x1e   : > { %1007 = vmatprep.subr.bf16.mxu1 %v1006_v14  ;;  %p1060_p13 = pneg %p1059_p12 }
  0x1f   : > { %931 = vmatmul.mubr.msk.f32.vlgmr.msra.gmra.mrb[0].mxu0 %vm183_vm0, %v176_v15 }
  0x20   : > { %1005 = vmatpush3.bf16.msra.mxu0 %v1002_v9  ;;  %933 = vmatprep.mubr.msk.f32.mxu0 %vm183_vm0, %v177_v16  ;;  %p1067_p3 = pnand %p1066_p2, %p1060_p13 }
  0x21   : > { %941 = vmatmul.mubr.msk.f32.vlgmr.msra.gmra.mrb[0].mxu1 %vm183_vm0, %v176_v15  ;;  %1011 = vmatprep.subr.bf16.mxu0 %v1010_v17 }
  0x22   : > { %1009 = vmatpush3.bf16.msra.mxu1 %v1006_v14  ;;  %943 = vmatprep.mubr.msk.f32.mxu1 %vm183_vm0, %v177_v16 }
  0x23   : > { %934 = vmatmul.mubr.msk.f32.gmra.mrb[2].mxu0 %vm183_vm0, %v178_v18  ;;  %1014 = vmatprep.subr.bf16.mxu1 %v1010_v17 }
  0x24   : > { %950 = vmatprep.mubr.msk.f32.mxu0 %vm183_vm0, %v175_v0 }
  0x25   : > { %944 = vmatmul.mubr.msk.f32.gmra.mrb[2].mxu1 %vm183_vm0, %v178_v18 }
  0x26   : > { %960 = vmatprep.mubr.msk.f32.mxu1 %vm183_vm0, %v175_v0 }
  0x27   : > { %951 = vmatmul.mubr.msk.f32.vlgmr.msra.gmra.mrb[4].mxu0 %vm183_vm0, %v176_v15 }
  0x28   : > { %953 = vmatprep.mubr.msk.f32.mxu0 %vm183_vm0, %v177_v16  ;;  %1013 = vmatpush3.bf16.msra.mxu0 %v1010_v17 }
  0x29   : > { %961 = vmatmul.mubr.msk.f32.vlgmr.msra.gmra.mrb[4].mxu1 %vm183_vm0, %v176_v15 }
  0x2a   : > { %963 = vmatprep.mubr.msk.f32.mxu1 %vm183_vm0, %v177_v16  ;;  %1015 = vmatpush3.bf16.msra.mxu1 %v1010_v17 }
  0x2b   : > { %954 = vmatmul.mubr.msk.f32.gmra.mrb[6].mxu0 %vm183_vm0, %v178_v18 }
  0x2d   : > { %964 = vmatmul.mubr.msk.f32.gmra.mrb[6].mxu1 %vm183_vm0, %v178_v18 }
  0xf2   : > { %v932_v19 = vpop.f32.mrb[0].mxu0 }
  0xf3   : > { %v262_v20 = vpop.f32.mrb[1].mxu0 }
  0xf4   : > { %970 = vmatprep.mubr.msk.f32.mxu0 %vm183_vm0, %v262_v20  ;;  %v942_v21 = vpop.f32.mrb[0].mxu1 }
  0xf5   : > { %971 = vmatmul.mubr.msk.f32.vlgmr.msra.gmra.mrb[8].mxu0 %vm183_vm0, %v932_v19  ;;  %v350_v22 = vpop.f32.mrb[1].mxu1 }
  0xf6   : > { %v935_v23 = vpop.f32.mrb[2].mxu0 }
  0xf7   : > { %v272_v24 = vpop.f32.mrb[3].mxu0 }
  0xf8   : > { %973 = vmatprep.mubr.msk.f32.mxu0 %vm183_vm0, %v272_v24  ;;  %v945_v25 = vpop.f32.mrb[2].mxu1 }
  0xf9   : > { %974 = vmatmul.mubr.msk.f32.gmra.mrb[10].mxu0 %vm183_vm0, %v935_v23  ;;  %v360_v26 = vpop.f32.mrb[3].mxu1 }
  0xfa   : > { %v952_v27 = vpop.f32.mrb[4].mxu0  ;;  %976 = vmatprep.mubr.msk.f32.mxu0 %vm183_vm0, %v350_v22 }
  0xfb   : > { %v438_v28 = vpop.f32.mrb[5].mxu0 }
  0xfc   : > { %982 = vmatprep.mubr.msk.f32.mxu1 %vm183_vm0, %v438_v28  ;;  %v962_v29 = vpop.f32.mrb[4].mxu1 }
  0xfd   : > { %977 = vmatmul.mubr.msk.f32.gmra.mrb[12].mxu0 %vm183_vm0, %v942_v21  ;;  %983 = vmatmul.mubr.msk.f32.vlgmr.msra.gmra.mrb[8].mxu1 %vm183_vm0, %v952_v27  ;;  %v526_v30 = vpop.f32.mrb[5].mxu1 }
  0xfe   : > { %v955_v31 = vpop.f32.mrb[6].mxu0  ;;  %979 = vmatprep.mubr.msk.f32.mxu0 %vm183_vm0, %v360_v26 }
  0xff   : > { %v448_v32 = vpop.f32.mrb[7].mxu0 }
 0x100   : > { %985 = vmatprep.mubr.msk.f32.mxu1 %vm183_vm0, %v448_v32  ;;  %v965_v33 = vpop.f32.mrb[6].mxu1 }
 0x101   : > { %980 = vmatmul.mubr.msk.f32.gmra.mrb[14].mxu0 %vm183_vm0, %v945_v25  ;;  %986 = vmatmul.mubr.msk.f32.gmra.mrb[10].mxu1 %vm183_vm0, %v955_v31  ;;  %v536_v34 = vpop.f32.mrb[7].mxu1 }
 0x102   : > { %988 = vmatprep.mubr.msk.f32.mxu1 %vm183_vm0, %v526_v30 }
 0x105   : > { %989 = vmatmul.mubr.msk.f32.gmra.mrb[12].mxu1 %vm183_vm0, %v962_v29 }
 0x106   : > { %991 = vmatprep.mubr.msk.f32.mxu1 %vm183_vm0, %v536_v34 }
 0x109   : > { %992 = vmatmul.mubr.msk.f32.gmra.mrb[14].mxu1 %vm183_vm0, %v965_v33 }
 0x1c8   : > { %v972_v35 = vpop.f32.mrb[8].mxu0 }
 0x1c9   : > { %740 = vst.msk [vmem:[%s1249_s25 + $0x8] sm:$0xff] %vm738_vm1, %v972_v35  ;;  %v659_v36 = vpop.f32.mrb[9].mxu0 }
 0x1ca   : > { %739 = vst.msk [vmem:[%s1249_s25] sm:$0xff] %vm738_vm1, %v659_v36 }
 0x1cc   : > { %v975_v37 = vpop.f32.mrb[10].mxu0 }
 0x1cd   : > { %742 = vst.msk [vmem:[%s1249_s25 + $0x18] sm:$0xff] %vm738_vm1, %v975_v37  ;;  %v669_v38 = vpop.f32.mrb[11].mxu0 }
 0x1ce   : > { %741 = vst.msk [vmem:[%s1249_s25 + $0x10] sm:$0xff] %vm738_vm1, %v669_v38 }
 0x1d0   : > { %v978_v39 = vpop.f32.mrb[12].mxu0  ;;  %v984_v40 = vpop.f32.mrb[8].mxu1 }
 0x1d1   : > { %744 = vst.msk [vmem:[%s1249_s25 + $0x28] sm:$0xff] %vm738_vm1, %v978_v39  ;;  %748 = vst.msk [vmem:[%s1249_s25 + $0x48] sm:$0xff] %vm738_vm1, %v984_v40  ;;  %v679_v41 = vpop.f32.mrb[13].mxu0  ;;  %v699_v42 = vpop.f32.mrb[9].mxu1 }
 0x1d2   : > { %743 = vst.msk [vmem:[%s1249_s25 + $0x20] sm:$0xff] %vm738_vm1, %v679_v41  ;;  %747 = vst.msk [vmem:[%s1249_s25 + $0x40] sm:$0xff] %vm738_vm1, %v699_v42 }
 0x1d4   : > { %v981_v43 = vpop.f32.mrb[14].mxu0  ;;  %v987_v44 = vpop.f32.mrb[10].mxu1 }
 0x1d5   : > { %746 = vst.msk [vmem:[%s1249_s25 + $0x38] sm:$0xff] %vm738_vm1, %v981_v43  ;;  %750 = vst.msk [vmem:[%s1249_s25 + $0x58] sm:$0xff] %vm738_vm1, %v987_v44  ;;  %v689_v45 = vpop.f32.mrb[15].mxu0  ;;  %v709_v46 = vpop.f32.mrb[11].mxu1 }
 0x1d6   : > { %745 = vst.msk [vmem:[%s1249_s25 + $0x30] sm:$0xff] %vm738_vm1, %v689_v45  ;;  %749 = vst.msk [vmem:[%s1249_s25 + $0x50] sm:$0xff] %vm738_vm1, %v709_v46 }
 0x1d8   : > { %v990_v47 = vpop.f32.mrb[12].mxu1 }
 0x1d9   : > { %752 = vst.msk [vmem:[%s1249_s25 + $0x68] sm:$0xff] %vm738_vm1, %v990_v47  ;;  %v719_v48 = vpop.f32.mrb[13].mxu1 }
 0x1da   : > { %751 = vst.msk [vmem:[%s1249_s25 + $0x60] sm:$0xff] %vm738_vm1, %v719_v48 }
 0x1dc   : > { %v993_v49 = vpop.f32.mrb[14].mxu1 }
 0x1dd   : > { %754 = vst.msk [vmem:[%s1249_s25 + $0x78] sm:$0xff] %vm738_vm1, %v993_v49  ;;  %v729_v50 = vpop.f32.mrb[15].mxu1 }
 0x1de   : > { %753 = vst.msk [vmem:[%s1249_s25 + $0x70] sm:$0xff] %vm738_vm1, %v729_v50 }
 0x1df   : > { %1070 = shalt.err (!%p1067_p3)
}
 0x1e0   : > { %s1071_s8 = scalar_lea.hbm %s1284_s30, 2048  ;;  %s1075_s11 = scalar_lea.hbm %s1338_s3, 4096 }
 0x1e1   : > { %p1072_p4 = scmp.ne.s32.totalorder %s1284_s30, %s1071_s8  ;;  %p1076_p9 = scmp.lt.u32.totalorder %s1284_s30, %s1338_s3 }
 0x1e2   : > { %p1077_p10 = scmp.lt.u32.totalorder %s1075_s11, %s1071_s8  ;;  %p1079_p12 = scmp.lt.u32.totalorder %s1071_s8, %s1284_s30 }
 0x1e3   : > { %p1073_p7 = pnand %p1072_p4, %p1182_p5 }
 0x1e4   : > { %p1078_p11 = por %p1077_p10, %p1076_p9 }
 0x1e5   : > { %p1074_p8 = pneg %p1073_p7 }
 0x1e6   : > { %p1080_p13 = por %p1079_p12, %p1078_p11 }
 0x1e8   : > { %p1081_p0 = pnand %p1080_p13, %p1074_p8 }
 0x1ea   : > { %1084 = shalt.err (!%p1081_p0)
}
 0x1eb   : > { %s1122_s20 = smov 128   ;;  %s1123_s24 = smov 8  }
 0x1ec   : > { %1016 = dma.vmem_to_hbm [thread:$0]  (%p1182_p5), %s1286_s27, 2048, %s1284_s30, %s1294_s16, %s1122_s20, %s1122_s20, %s1123_s24  }
 0x1ed PF: > { %p1022_p1 = scmp.ge.s32.totalorder %s1119_s15, 2  ;;  %s784_s25 = sand.u32 1, %s1107_s12  }
 0x1ee   : > { %s785_s26 = scalar_lea.sflag [#allocation3], %s784_s25 }
 0x1ef   : > { %p1019_p2 = pnand %p1022_p1, %p1186_p6 }
 0x1f1   : > { %1102 = dma.done.wait (!%p1019_p2), %s785_s26, 2048  }
 0x1f2   : > { %1104 = vsyncadd (!%p1019_p2), %s785_s26, 4294965248  ;;  %p13_p3 = scmp.ge.s32.totalorder %s1169_s18, 4   ;;  %s1341_s12 = smov %s1111_s13 }
 0x1f3   : > { %s1342_s13 = smov %s1115_s14  ;;  %s1343_s14 = smov %s1180_s21 }
 0x1f4   : > { %s1344_s15 = smov %s1169_s18  ;;  %15 = sbr.rel (!%p13_p3) target bundleno = 3 (0x3), region = 70 }
 0x1fb   :  { %790 = vsyncpa [#allocation3], 1 }
 0x1fc   :  { %792 = vsyncpa [#allocation3 + $0x1], 1 }

</bundles_post_ra>
